<compile_context>
chip_gen: v7x
topology: tpu7x:2x2x1
jax: 0.10.0
libtpu: 0.0.40
codegen_flags: <defaults>
</compile_context>

<pallas_src>
import math
import functools

import jax
import jax.numpy as jnp
from jax.experimental import pallas as pl
from jax.experimental.pallas import tpu as pltpu


def _round_up(x, m):
    return ((x + m - 1) // m) * m


def _sublane_multiple(dtype):
    # 8 sublanes of 32-bit; packed dtypes need 16 (bf16) / 32 (int8, fp8) rows.
    return max(8, 32 // jnp.dtype(dtype).itemsize)


def _vmem_capacity_bytes():
    try:
        return int(pltpu.get_tpu_info().vmem_capacity_bytes)
    except Exception:
        return 64 << 20   # conservative: v7x physical VMEM per TensorCore


# ---------------------------------------------------------------------------
# Shared per-layer LSTM cell math (f32 elementwise, bf16 MXU operands).
#   gates = [x | h] @ W_cat + b    (W_cat columns for i/f/o pre-scaled by 0.5
#                                   so one tanh implements all sigmoids)
# ---------------------------------------------------------------------------
def _lstm_cell(xh_bf16, w_bf16, b_f32, c_f32, dp):
    gates = jnp.dot(xh_bf16, w_bf16, preferred_element_type=jnp.float32) + b_f32
    t = jnp.tanh(gates)
    i_g = 0.5 * (t[:, 0 * dp:1 * dp] + 1.0)
    f_g = 0.5 * (t[:, 1 * dp:2 * dp] + 1.0)
    g_g = t[:, 2 * dp:3 * dp]
    o_g = 0.5 * (t[:, 3 * dp:4 * dp] + 1.0)
    c_new = f_g * c_f32 + i_g * g_g
    h_new = o_g * jnp.tanh(c_new)
    return h_new, c_new


# ---------------------------------------------------------------------------
# Path A: grid-less call, ALL layer weights resident in VMEM, in-kernel loop
# over layers.  Inter-layer activation carried in a persistent bf16 scratch:
#   xh_sc[:, :Dp] = current layer input x (bf16, MXU LHS)
#   xh_sc[:, Dp:] = current layer hidden state h (bf16, MXU LHS)
# ---------------------------------------------------------------------------
def _decoder_lstm_loop_kernel(x_ref, h_ref, c_ref, w_ref, b_ref,
                              h_out_ref, c_out_ref, xh_sc):
    num_layers = h_ref.shape[0]
    dp = c_ref.shape[-1]          # padded dim_embed (multiple of 128)

    xh_sc[:, 0:dp] = x_ref[...].astype(xh_sc.dtype)

    # num_layers is small and static -> fully unrolled straight-line code.
    for layer in range(num_layers):
        xh_sc[:, dp:2 * dp] = h_ref[layer].astype(xh_sc.dtype)
        c = c_ref[layer].astype(jnp.float32)
        h_new, c_new = _lstm_cell(xh_sc[...], w_ref[layer], b_ref[layer], c, dp)
        h_out_ref[layer] = h_new.astype(h_out_ref.dtype)
        c_out_ref[layer] = c_new.astype(c_out_ref.dtype)
        # This layer's hidden state feeds the next layer's input.
        xh_sc[:, 0:dp] = h_new.astype(xh_sc.dtype)


def _fused_loop_call(x_pad, h_pad, c_pad, w, b, vmem_limit):
    num_layers, bp, dp = h_pad.shape
    out_sds = jax.ShapeDtypeStruct((num_layers, bp, dp), h_pad.dtype)
    # No grid -> every operand is a single whole-array VMEM block (no
    # per-layer grid-step overhead, one contiguous weight DMA).
    return pl.pallas_call(
        _decoder_lstm_loop_kernel,
        out_shape=(out_sds, out_sds),
        scratch_shapes=[pltpu.VMEM((bp, 2 * dp), jnp.bfloat16)],
        input_output_aliases={1: 0, 2: 1},       # update h, c in place
        compiler_params=pltpu.CompilerParams(vmem_limit_bytes=vmem_limit),
    )(x_pad, h_pad, c_pad, w, b)


# ---------------------------------------------------------------------------
# Path B (fallback for large models): grid = (num_layers,), per-layer weight
# block double-buffered by the Pallas pipeline (layer l+1 weights prefetched
# while layer l computes).
# ---------------------------------------------------------------------------
def _decoder_lstm_layer_kernel(x_ref, h_ref, c_ref, w_ref, b_ref,
                               h_out_ref, c_out_ref, xh_sc):
    layer = pl.program_id(0)
    dp = c_ref.shape[-1]

    @pl.when(layer == 0)
    def _():
        xh_sc[:, 0:dp] = x_ref[...].astype(xh_sc.dtype)

    xh_sc[:, dp:2 * dp] = h_ref[...].astype(xh_sc.dtype)
    c = c_ref[...].astype(jnp.float32)
    h_new, c_new = _lstm_cell(xh_sc[...], w_ref[...], b_ref[...], c, dp)
    h_out_ref[...] = h_new.astype(h_out_ref.dtype)
    c_out_ref[...] = c_new.astype(c_out_ref.dtype)
    xh_sc[:, 0:dp] = h_new.astype(xh_sc.dtype)


def _layer_grid_call(x_pad, h_pad, c_pad, w, b, vmem_limit):
    num_layers, bp, dp = h_pad.shape
    out_sds = jax.ShapeDtypeStruct((num_layers, bp, dp), h_pad.dtype)

    # TODO(synk): for very large Dp on v7x, add a gate-axis (4*Dp) tile:
    # grid=(L, 4Dp//tn) with weight block (2Dp, tn) accumulated into a
    # (bp, 4Dp) VMEM scratch, cell update on the last chunk.
    in_specs = (
        pl.BlockSpec((bp, dp), lambda l: (0, 0)),                   # x (layer 0)
        pl.BlockSpec((None, bp, dp), lambda l: (l, 0, 0)),          # h[l]
        pl.BlockSpec((None, bp, dp), lambda l: (l, 0, 0)),          # c[l]
        pl.BlockSpec((None, 2 * dp, 4 * dp), lambda l: (l, 0, 0)),  # W_cat[l]
        pl.BlockSpec((None, 1, 4 * dp), lambda l: (l, 0, 0)),       # bias[l]
    )
    out_specs = (
        pl.BlockSpec((None, bp, dp), lambda l: (l, 0, 0)),          # h_new[l]
        pl.BlockSpec((None, bp, dp), lambda l: (l, 0, 0)),          # c_new[l]
    )
    return pl.pallas_call(
        _decoder_lstm_layer_kernel,
        out_shape=(out_sds, out_sds),
        grid=(num_layers,),
        in_specs=in_specs,
        out_specs=out_specs,
        scratch_shapes=[pltpu.VMEM((bp, 2 * dp), jnp.bfloat16)],
        input_output_aliases={1: 0, 2: 1},
        compiler_params=pltpu.CompilerParams(
            dimension_semantics=("arbitrary",),   # layers are sequential
            vmem_limit_bytes=vmem_limit),
    )(x_pad, h_pad, c_pad, w, b)


# ---------------------------------------------------------------------------
# Path selection + VMEM budgeting.
# ---------------------------------------------------------------------------
def _choose_path(num_layers, bp, dp, w_itemsize, b_itemsize):
    cap = _vmem_capacity_bytes()
    # Scoped VMEM limit: full capacity minus headroom for compiler scratch.
    vmem_limit = int(max(cap - (8 << 20), 32 << 20))

    # Path-A footprint: all weights + state in/out + activations + scratch.
    weight_bytes = num_layers * (2 * dp) * (4 * dp) * w_itemsize
    bias_bytes = num_layers * (4 * dp) * b_itemsize
    state_bytes = 4 * num_layers * bp * dp * 4 + bp * dp * 4   # h/c in+out, x
    scratch_bytes = bp * (2 * dp) * 2
    interm_bytes = 8 * bp * (4 * dp) * 4
    need = (weight_bytes + bias_bytes + state_bytes + scratch_bytes
            + interm_bytes + (4 << 20))
    fused_ok = (need <= cap - (16 << 20)) and (num_layers <= 64)
    return fused_ok, vmem_limit


def _decoder_lstm_call(x_pad, h_pad, c_pad, w, b, *, force_layer_grid=False):
    num_layers, bp, dp = h_pad.shape
    fused_ok, vmem_limit = _choose_path(
        num_layers, bp, dp,
        jnp.dtype(w.dtype).itemsize, jnp.dtype(b.dtype).itemsize)
    if fused_ok and not force_layer_grid:
        return _fused_loop_call(x_pad, h_pad, c_pad, w, b, vmem_limit)
    return _layer_grid_call(x_pad, h_pad, c_pad, w, b, vmem_limit)


# ---------------------------------------------------------------------------
# Parameter init (PyTorch nn.LSTM shapes) and packing for the fused kernel.
# ---------------------------------------------------------------------------
def init_decoder_params(key, dim_embed, num_layers, dtype=jnp.float32):
    """Canonical PyTorch-shaped params per layer:
       W_ih (4D, D), W_hh (4D, D), b_ih (4D,), b_hh (4D,); gate order i,f,g,o."""
    params = []
    stdv = 1.0 / math.sqrt(dim_embed)
    for _ in range(num_layers):
        key, k1, k2, k3, k4 = jax.random.split(key, 5)
        params.append({
            "w_ih": jax.random.uniform(k1, (4 * dim_embed, dim_embed), dtype,
                                       -stdv, stdv),
            "w_hh": jax.random.uniform(k2, (4 * dim_embed, dim_embed), dtype,
                                       -stdv, stdv),
            "b_ih": jax.random.uniform(k3, (4 * dim_embed,), dtype, -stdv, stdv),
            "b_hh": jax.random.uniform(k4, (4 * dim_embed,), dtype, -stdv, stdv),
        })
    return params


def pack_decoder_params(params, dim_embed, weight_dtype=jnp.bfloat16):
    """Pack per-layer weights into the fused, padded, pre-scaled layout:
       w: (L, 2*Dp, 4*Dp)  rows [0:D]=W_ih^T, [Dp:Dp+D]=W_hh^T, gate k in cols
                           [k*Dp : k*Dp+D]; i/f/o columns pre-scaled by 0.5.
                           Stored in `weight_dtype` (bf16 by default: the
                           weight stream dominates HBM traffic at decode
                           shapes; the 0.5 scale is exact in any binary FP).
       b: (L, 1, 4*Dp)     b_ih + b_hh, same layout / scaling, kept f32
                           (negligible bytes, preserves accumulation precision).
    """
    # TODO(synk): optional int8 (v5e/v6e) / fp8 (v7x) weight quantization with
    # per-output-channel scales applied to the gate columns after the f32-accum
    # dot would halve weight bytes again.
    d = dim_embed
    dp = _round_up(d, 128)
    gate_scale = (0.5, 0.5, 1.0, 0.5)   # i, f, g, o  (tanh-based sigmoid fold)
    w_layers, b_layers = [], []
    for p in params:
        w_ih_t = p["w_ih"].astype(jnp.float32).T     # (D, 4D)
        w_hh_t = p["w_hh"].astype(jnp.float32).T     # (D, 4D)
        bias = (p["b_ih"] + p["b_hh"]).astype(jnp.float32)   # (4D,)
        w = jnp.zeros((2 * dp, 4 * dp), jnp.float32)
        b = jnp.zeros((1, 4 * dp), jnp.float32)
        for k, s in enumerate(gate_scale):
            col = slice(k * dp, k * dp + d)
            w = w.at[0:d, col].set(s * w_ih_t[:, k * d:(k + 1) * d])
            w = w.at[dp:dp + d, col].set(s * w_hh_t[:, k * d:(k + 1) * d])
            b = b.at[0, col].set(s * bias[k * d:(k + 1) * d])
        w_layers.append(w.astype(weight_dtype))
        b_layers.append(b)
    return {"w": jnp.stack(w_layers, axis=0), "b": jnp.stack(b_layers, axis=0)}


# ---------------------------------------------------------------------------
# Padded-state API (hot decode loop: no per-step pad/slice work).
# ---------------------------------------------------------------------------
def pad_decoder_inputs(input_, h, c, dp):
    """Pad once, outside the decode loop.  Returns (x_pad, h_pad, c_pad)."""
    num_layers, batch, d = h.shape
    bp = _round_up(batch, _sublane_multiple(h.dtype))
    x_pad = jnp.zeros((bp, dp), input_.dtype).at[:batch, :d].set(input_)
    h_pad = jnp.zeros((num_layers, bp, dp), h.dtype).at[:, :batch, :d].set(h)
    c_pad = jnp.zeros((num_layers, bp, dp), c.dtype).at[:, :batch, :d].set(c)
    return x_pad, h_pad, c_pad


@functools.partial(jax.jit, static_argnames=("force_layer_grid",))
def decoder_step_padded(packed, x_pad, h_pad, c_pad, *, force_layer_grid=False):
    """One decode step on persistent padded state.
       Returns (output_pad (Bp, Dp), (h_pad_new, c_pad_new))."""
    h_out, c_out = _decoder_lstm_call(x_pad, h_pad, c_pad,
                                      packed["w"], packed["b"],
                                      force_layer_grid=force_layer_grid)
    return h_out[-1], (h_out, c_out)


# ---------------------------------------------------------------------------
# Decoder forward (PyTorch-style convenience wrapper): single time step
# through all layers; pads inputs and slices outputs (use the padded-state API
# above inside real decode loops).
# ---------------------------------------------------------------------------
@functools.partial(jax.jit, static_argnames=("force_layer_grid",))
def decoder_forward(packed, input_, h, c, *, force_layer_grid=False):
    """input_ (B, D); h, c (L, B, D) ->
       (output (B, D), (h_new (L, B, D), c_new (L, B, D)))."""
    num_layers, batch, d = h.shape
    dp = packed["w"].shape[1] // 2
    x_pad, h_pad, c_pad = pad_decoder_inputs(input_, h, c, dp)
    h_out, c_out = _decoder_lstm_call(x_pad, h_pad, c_pad,
                                      packed["w"], packed["b"],
                                      force_layer_grid=force_layer_grid)
    h_new = h_out[:, :batch, :d]
    c_new = c_out[:, :batch, :d]
    return h_new[num_layers - 1], (h_new, c_new)


# TODO(synk): for large batches on v7x, add a leading "parallel" grid axis
# over batch tiles so the two TensorCores split rows (layer axis stays
# "arbitrary"); skipped here since decode batches are tiny.


# ---------------------------------------------------------------------------
# Pure-JAX references (standard sigmoid/tanh LSTM cell, PyTorch semantics).
# `matmul_dtype=bf16` emulates the kernel's bf16 MXU operands for a tight
# correctness check; matmul_dtype=None is the exact f32 reference.
# ---------------------------------------------------------------------------
def decoder_forward_ref(params, input_, h, c, matmul_dtype=None):
    def mm(a, b):
        if matmul_dtype is not None:
            a = a.astype(matmul_dtype)
            b = b.astype(matmul_dtype)
        return jnp.dot(a, b, preferred_element_type=jnp.float32)

    x = input_
    d = x.shape[1]
    h_list, c_list = [], []
    for layer, p in enumerate(params):
        gates = (mm(x, p["w_ih"].T) + mm(h[layer], p["w_hh"].T)
                 + p["b_ih"] + p["b_hh"])
        i = jax.nn.sigmoid(gates[:, 0 * d:1 * d])
        f = jax.nn.sigmoid(gates[:, 1 * d:2 * d])
        g = jnp.tanh(gates[:, 2 * d:3 * d])
        o = jax.nn.sigmoid(gates[:, 3 * d:4 * d])
        c_new = f * c[layer] + i * g
        h_new = o * jnp.tanh(c_new)
        h_list.append(h_new)
        c_list.append(c_new)
        x = h_new
    return x, (jnp.stack(h_list, axis=0), jnp.stack(c_list, axis=0))


if __name__ == "__main__":
    batch = 8
    dim_embed = 32
    num_layers = 2

    key = jax.random.PRNGKey(0)
    kp, kx, kh, kc = jax.random.split(key, 4)

    params = init_decoder_params(kp, dim_embed, num_layers)
    packed = pack_decoder_params(params, dim_embed)     # bf16 weights

    x = jax.random.normal(kx, (batch, dim_embed), jnp.float32)
    h0 = jax.random.normal(kh, (num_layers, batch, dim_embed), jnp.float32)
    c0 = jax.random.normal(kc, (num_layers, batch, dim_embed), jnp.float32)

    # Path A: fused in-kernel layer loop (weights resident in VMEM).
    out, (h1, c1) = decoder_forward(packed, x, h0, c0)
    jax.block_until_ready((out, h1, c1))

    # Path B: layer-grid double-buffered pipeline (forced, for coverage).
    out_b, (h1_b, c1_b) = decoder_forward(packed, x, h0, c0,
                                          force_layer_grid=True)
    jax.block_until_ready((out_b, h1_b, c1_b))

    # Persistent padded-state step (hot decode-loop API; no per-step pad/slice).
    dp = packed["w"].shape[1] // 2
    x_pad, h_pad, c_pad = pad_decoder_inputs(x, h0, c0, dp)
    out_p, (h_pad1, c_pad1) = decoder_step_padded(packed, x_pad, h_pad, c_pad)
    jax.block_until_ready((out_p, h_pad1, c_pad1))

    # References.
    out_r32, (h1_r32, c1_r32) = decoder_forward_ref(params, x, h0, c0)
    out_rbf, (h1_rbf, c1_rbf) = decoder_forward_ref(params, x, h0, c0,
                                                    matmul_dtype=jnp.bfloat16)

    assert out.shape == (batch, dim_embed)
    assert h1.shape == (num_layers, batch, dim_embed)
    assert c1.shape == (num_layers, batch, dim_embed)

    # Tight check vs. the bf16-MXU-emulating reference (implementation proof).
    tight = dict(atol=2e-3, rtol=2e-3)
    assert jnp.allclose(out, out_rbf, **tight)
    assert jnp.allclose(h1, h1_rbf, **tight)
    assert jnp.allclose(c1, c1_rbf, **tight)

    # Loose sanity check vs. the exact f32 reference (bf16 weight drift).
    loose = dict(atol=1e-1, rtol=1e-1)
    assert jnp.allclose(out, out_r32, **loose)
    assert jnp.allclose(h1, h1_r32, **loose)
    assert jnp.allclose(c1, c1_r32, **loose)

    # Both kernel paths agree, and the padded-state step matches path A.
    assert jnp.allclose(out_b, out, atol=1e-5, rtol=1e-5)
    assert jnp.allclose(h1_b, h1, atol=1e-5, rtol=1e-5)
    assert jnp.allclose(c1_b, c1, atol=1e-5, rtol=1e-5)
    assert jnp.allclose(out_p[:batch, :dim_embed], out, atol=1e-5, rtol=1e-5)

    print("KERNEL_OK")
</pallas_src>

<mosaic_0001>
module attributes {stable_mosaic.version = 11 : i64} {
  func.func @_decoder_lstm_loop_kernel(%arg0: memref<8x128xf32, #tpu.memory_space<vmem>>, %arg1: memref<2x8x128xf32, #tpu.memory_space<vmem>>, %arg2: memref<2x8x128xf32, #tpu.memory_space<vmem>>, %arg3: memref<2x256x512xbf16, #tpu.memory_space<vmem>>, %arg4: memref<2x1x512xf32, #tpu.memory_space<vmem>>, %arg5: memref<2x8x128xf32, #tpu.memory_space<vmem>>, %arg6: memref<2x8x128xf32, #tpu.memory_space<vmem>>, %arg7: memref<8x256xbf16, #tpu.memory_space<vmem>>) attributes {dimension_semantics = [], scalar_prefetch = 0 : i64, scratch_operands = 1 : i64, tpu.core_type = #tpu.core_type<tc>} {
    %c0 = arith.constant 0 : index
    %c0_0 = arith.constant 0 : index
    %0 = vector.load %arg0[%c0, %c0_0] : memref<8x128xf32, #tpu.memory_space<vmem>>, vector<8x128xf32>
    %1 = arith.truncf %0 : vector<8x128xf32> to vector<8x128xbf16>
    %c0_1 = arith.constant 0 : index
    %c0_2 = arith.constant 0 : index
    %2 = vector.load %arg7[%c0_1, %c0_2] : memref<8x256xbf16, #tpu.memory_space<vmem>>, vector<8x128xbf16>
    tpu.vector_store %arg7[%c0_1, %c0_2], %1 {strides = array<i32>} : memref<8x256xbf16, #tpu.memory_space<vmem>>, vector<8x128xbf16>,
    %c0_3 = arith.constant 0 : index
    %c0_4 = arith.constant 0 : index
    %c0_5 = arith.constant 0 : index
    %3 = vector.load %arg1[%c0_3, %c0_4, %c0_5] : memref<2x8x128xf32, #tpu.memory_space<vmem>>, vector<1x8x128xf32>
    %4 = vector.shape_cast %3 : vector<1x8x128xf32> to vector<8x128xf32>
    %5 = arith.truncf %4 : vector<8x128xf32> to vector<8x128xbf16>
    %c0_6 = arith.constant 0 : index
    %c128 = arith.constant 128 : index
    %6 = vector.load %arg7[%c0_6, %c128] : memref<8x256xbf16, #tpu.memory_space<vmem>>, vector<8x128xbf16>
    tpu.vector_store %arg7[%c0_6, %c128], %5 {strides = array<i32>} : memref<8x256xbf16, #tpu.memory_space<vmem>>, vector<8x128xbf16>,
    %c0_7 = arith.constant 0 : index
    %c0_8 = arith.constant 0 : index
    %c0_9 = arith.constant 0 : index
    %7 = vector.load %arg2[%c0_7, %c0_8, %c0_9] : memref<2x8x128xf32, #tpu.memory_space<vmem>>, vector<1x8x128xf32>
    %8 = vector.shape_cast %7 : vector<1x8x128xf32> to vector<8x128xf32>
    %c0_10 = arith.constant 0 : index
    %c0_11 = arith.constant 0 : index
    %9 = vector.load %arg7[%c0_10, %c0_11] : memref<8x256xbf16, #tpu.memory_space<vmem>>, vector<8x256xbf16>
    %c0_12 = arith.constant 0 : index
    %c0_13 = arith.constant 0 : index
    %c0_14 = arith.constant 0 : index
    %10 = vector.load %arg3[%c0_12, %c0_13, %c0_14] : memref<2x256x512xbf16, #tpu.memory_space<vmem>>, vector<1x256x512xbf16>
    %11 = vector.shape_cast %10 : vector<1x256x512xbf16> to vector<256x512xbf16>
    %c0_15 = arith.constant 0 : index
    %c0_16 = arith.constant 0 : index
    %c0_17 = arith.constant 0 : index
    %12 = vector.load %arg4[%c0_15, %c0_16, %c0_17] : memref<2x1x512xf32, #tpu.memory_space<vmem>>, vector<1x1x512xf32>
    %13 = vector.shape_cast %12 : vector<1x1x512xf32> to vector<1x512xf32>
    %cst = arith.constant dense<0.000000e+00> : vector<8x512xf32>
    %14 = tpu.matmul %9, %11, %cst {dimension_numbers = #tpu.dot_dimension_numbers<[1], [0], [0], [1], [0, 0, 1, 1], [], []>} : vector<8x256xbf16>, vector<256x512xbf16>, vector<8x512xf32> -> vector<8x512xf32>
    %15 = vector.broadcast %13 : vector<1x512xf32> to vector<8x512xf32>
    %16 = arith.addf %14, %15 : vector<8x512xf32>
    %17 = math.tanh %16 : vector<8x512xf32>
    %18 = vector.extract_strided_slice %17 {offsets = [0, 0], sizes = [8, 128], strides = [1, 1]} : vector<8x512xf32> to vector<8x128xf32>
    %cst_18 = arith.constant 1.000000e+00 : f32
    %19 = vector.broadcast %cst_18 : f32 to vector<8x128xf32>
    %20 = arith.addf %18, %19 : vector<8x128xf32>
    %cst_19 = arith.constant 5.000000e-01 : f32
    %21 = vector.broadcast %cst_19 : f32 to vector<8x128xf32>
    %22 = arith.mulf %21, %20 : vector<8x128xf32>
    %23 = vector.extract_strided_slice %17 {offsets = [0, 128], sizes = [8, 128], strides = [1, 1]} : vector<8x512xf32> to vector<8x128xf32>
    %cst_20 = arith.constant 1.000000e+00 : f32
    %24 = vector.broadcast %cst_20 : f32 to vector<8x128xf32>
    %25 = arith.addf %23, %24 : vector<8x128xf32>
    %cst_21 = arith.constant 5.000000e-01 : f32
    %26 = vector.broadcast %cst_21 : f32 to vector<8x128xf32>
    %27 = arith.mulf %26, %25 : vector<8x128xf32>
    %28 = vector.extract_strided_slice %17 {offsets = [0, 256], sizes = [8, 128], strides = [1, 1]} : vector<8x512xf32> to vector<8x128xf32>
    %29 = vector.extract_strided_slice %17 {offsets = [0, 384], sizes = [8, 128], strides = [1, 1]} : vector<8x512xf32> to vector<8x128xf32>
    %cst_22 = arith.constant 1.000000e+00 : f32
    %30 = vector.broadcast %cst_22 : f32 to vector<8x128xf32>
    %31 = arith.addf %29, %30 : vector<8x128xf32>
    %cst_23 = arith.constant 5.000000e-01 : f32
    %32 = vector.broadcast %cst_23 : f32 to vector<8x128xf32>
    %33 = arith.mulf %32, %31 : vector<8x128xf32>
    %34 = arith.mulf %27, %8 : vector<8x128xf32>
    %35 = arith.mulf %22, %28 : vector<8x128xf32>
    %36 = arith.addf %34, %35 : vector<8x128xf32>
    %37 = math.tanh %36 : vector<8x128xf32>
    %38 = arith.mulf %33, %37 : vector<8x128xf32>
    %c0_24 = arith.constant 0 : index
    %c0_25 = arith.constant 0 : index
    %c0_26 = arith.constant 0 : index
    %39 = vector.load %arg5[%c0_24, %c0_25, %c0_26] : memref<2x8x128xf32, #tpu.memory_space<vmem>>, vector<1x8x128xf32>
    %40 = vector.shape_cast %39 : vector<1x8x128xf32> to vector<8x128xf32>
    %41 = vector.shape_cast %38 : vector<8x128xf32> to vector<1x8x128xf32>
    tpu.vector_store %arg5[%c0_24, %c0_25, %c0_26], %41 {strides = array<i32>} : memref<2x8x128xf32, #tpu.memory_space<vmem>>, vector<1x8x128xf32>,
    %c0_27 = arith.constant 0 : index
    %c0_28 = arith.constant 0 : index
    %c0_29 = arith.constant 0 : index
    %42 = vector.load %arg6[%c0_27, %c0_28, %c0_29] : memref<2x8x128xf32, #tpu.memory_space<vmem>>, vector<1x8x128xf32>
    %43 = vector.shape_cast %42 : vector<1x8x128xf32> to vector<8x128xf32>
    %44 = vector.shape_cast %36 : vector<8x128xf32> to vector<1x8x128xf32>
    tpu.vector_store %arg6[%c0_27, %c0_28, %c0_29], %44 {strides = array<i32>} : memref<2x8x128xf32, #tpu.memory_space<vmem>>, vector<1x8x128xf32>,
    %45 = arith.truncf %38 : vector<8x128xf32> to vector<8x128xbf16>
    %c0_30 = arith.constant 0 : index
    %c0_31 = arith.constant 0 : index
    %46 = vector.load %arg7[%c0_30, %c0_31] : memref<8x256xbf16, #tpu.memory_space<vmem>>, vector<8x128xbf16>
    tpu.vector_store %arg7[%c0_30, %c0_31], %45 {strides = array<i32>} : memref<8x256xbf16, #tpu.memory_space<vmem>>, vector<8x128xbf16>,
    %c1 = arith.constant 1 : index
    %c0_32 = arith.constant 0 : index
    %c0_33 = arith.constant 0 : index
    %47 = vector.load %arg1[%c1, %c0_32, %c0_33] : memref<2x8x128xf32, #tpu.memory_space<vmem>>, vector<1x8x128xf32>
    %48 = vector.shape_cast %47 : vector<1x8x128xf32> to vector<8x128xf32>
    %49 = arith.truncf %48 : vector<8x128xf32> to vector<8x128xbf16>
    %c0_34 = arith.constant 0 : index
    %c128_35 = arith.constant 128 : index
    %50 = vector.load %arg7[%c0_34, %c128_35] : memref<8x256xbf16, #tpu.memory_space<vmem>>, vector<8x128xbf16>
    tpu.vector_store %arg7[%c0_34, %c128_35], %49 {strides = array<i32>} : memref<8x256xbf16, #tpu.memory_space<vmem>>, vector<8x128xbf16>,
    %c1_36 = arith.constant 1 : index
    %c0_37 = arith.constant 0 : index
    %c0_38 = arith.constant 0 : index
    %51 = vector.load %arg2[%c1_36, %c0_37, %c0_38] : memref<2x8x128xf32, #tpu.memory_space<vmem>>, vector<1x8x128xf32>
    %52 = vector.shape_cast %51 : vector<1x8x128xf32> to vector<8x128xf32>
    %c0_39 = arith.constant 0 : index
    %c0_40 = arith.constant 0 : index
    %53 = vector.load %arg7[%c0_39, %c0_40] : memref<8x256xbf16, #tpu.memory_space<vmem>>, vector<8x256xbf16>
    %c1_41 = arith.constant 1 : index
    %c0_42 = arith.constant 0 : index
    %c0_43 = arith.constant 0 : index
    %54 = vector.load %arg3[%c1_41, %c0_42, %c0_43] : memref<2x256x512xbf16, #tpu.memory_space<vmem>>, vector<1x256x512xbf16>
    %55 = vector.shape_cast %54 : vector<1x256x512xbf16> to vector<256x512xbf16>
    %c1_44 = arith.constant 1 : index
    %c0_45 = arith.constant 0 : index
    %c0_46 = arith.constant 0 : index
    %56 = vector.load %arg4[%c1_44, %c0_45, %c0_46] : memref<2x1x512xf32, #tpu.memory_space<vmem>>, vector<1x1x512xf32>
    %57 = vector.shape_cast %56 : vector<1x1x512xf32> to vector<1x512xf32>
    %cst_47 = arith.constant dense<0.000000e+00> : vector<8x512xf32>
    %58 = tpu.matmul %53, %55, %cst_47 {dimension_numbers = #tpu.dot_dimension_numbers<[1], [0], [0], [1], [0, 0, 1, 1], [], []>} : vector<8x256xbf16>, vector<256x512xbf16>, vector<8x512xf32> -> vector<8x512xf32>
    %59 = vector.broadcast %57 : vector<1x512xf32> to vector<8x512xf32>
    %60 = arith.addf %58, %59 : vector<8x512xf32>
    %61 = math.tanh %60 : vector<8x512xf32>
    %62 = vector.extract_strided_slice %61 {offsets = [0, 0], sizes = [8, 128], strides = [1, 1]} : vector<8x512xf32> to vector<8x128xf32>
    %cst_48 = arith.constant 1.000000e+00 : f32
    %63 = vector.broadcast %cst_48 : f32 to vector<8x128xf32>
    %64 = arith.addf %62, %63 : vector<8x128xf32>
    %cst_49 = arith.constant 5.000000e-01 : f32
    %65 = vector.broadcast %cst_49 : f32 to vector<8x128xf32>
    %66 = arith.mulf %65, %64 : vector<8x128xf32>
    %67 = vector.extract_strided_slice %61 {offsets = [0, 128], sizes = [8, 128], strides = [1, 1]} : vector<8x512xf32> to vector<8x128xf32>
    %cst_50 = arith.constant 1.000000e+00 : f32
    %68 = vector.broadcast %cst_50 : f32 to vector<8x128xf32>
    %69 = arith.addf %67, %68 : vector<8x128xf32>
    %cst_51 = arith.constant 5.000000e-01 : f32
    %70 = vector.broadcast %cst_51 : f32 to vector<8x128xf32>
    %71 = arith.mulf %70, %69 : vector<8x128xf32>
    %72 = vector.extract_strided_slice %61 {offsets = [0, 256], sizes = [8, 128], strides = [1, 1]} : vector<8x512xf32> to vector<8x128xf32>
    %73 = vector.extract_strided_slice %61 {offsets = [0, 384], sizes = [8, 128], strides = [1, 1]} : vector<8x512xf32> to vector<8x128xf32>
    %cst_52 = arith.constant 1.000000e+00 : f32
    %74 = vector.broadcast %cst_52 : f32 to vector<8x128xf32>
    %75 = arith.addf %73, %74 : vector<8x128xf32>
    %cst_53 = arith.constant 5.000000e-01 : f32
    %76 = vector.broadcast %cst_53 : f32 to vector<8x128xf32>
    %77 = arith.mulf %76, %75 : vector<8x128xf32>
    %78 = arith.mulf %71, %52 : vector<8x128xf32>
    %79 = arith.mulf %66, %72 : vector<8x128xf32>
    %80 = arith.addf %78, %79 : vector<8x128xf32>
    %81 = math.tanh %80 : vector<8x128xf32>
    %82 = arith.mulf %77, %81 : vector<8x128xf32>
    %c1_54 = arith.constant 1 : index
    %c0_55 = arith.constant 0 : index
    %c0_56 = arith.constant 0 : index
    %83 = vector.load %arg5[%c1_54, %c0_55, %c0_56] : memref<2x8x128xf32, #tpu.memory_space<vmem>>, vector<1x8x128xf32>
    %84 = vector.shape_cast %83 : vector<1x8x128xf32> to vector<8x128xf32>
    %85 = vector.shape_cast %82 : vector<8x128xf32> to vector<1x8x128xf32>
    tpu.vector_store %arg5[%c1_54, %c0_55, %c0_56], %85 {strides = array<i32>} : memref<2x8x128xf32, #tpu.memory_space<vmem>>, vector<1x8x128xf32>,
    %c1_57 = arith.constant 1 : index
    %c0_58 = arith.constant 0 : index
    %c0_59 = arith.constant 0 : index
    %86 = vector.load %arg6[%c1_57, %c0_58, %c0_59] : memref<2x8x128xf32, #tpu.memory_space<vmem>>, vector<1x8x128xf32>
    %87 = vector.shape_cast %86 : vector<1x8x128xf32> to vector<8x128xf32>
    %88 = vector.shape_cast %80 : vector<8x128xf32> to vector<1x8x128xf32>
    tpu.vector_store %arg6[%c1_57, %c0_58, %c0_59], %88 {strides = array<i32>} : memref<2x8x128xf32, #tpu.memory_space<vmem>>, vector<1x8x128xf32>,
    %89 = arith.truncf %82 : vector<8x128xf32> to vector<8x128xbf16>
    %c0_60 = arith.constant 0 : index
    %c0_61 = arith.constant 0 : index
    %90 = vector.load %arg7[%c0_60, %c0_61] : memref<8x256xbf16, #tpu.memory_space<vmem>>, vector<8x128xbf16>
    tpu.vector_store %arg7[%c0_60, %c0_61], %89 {strides = array<i32>} : memref<8x256xbf16, #tpu.memory_space<vmem>>, vector<8x128xbf16>,
    return
  }
}

</mosaic_0001>

<bundles_post_ra>
// kernel: decoder_forward.1
= control target key start
LH: loop header
LB: loop body
LE: loop exit
PB: predicated region body
PF: predicated region fallthrough
CT: control target
= control target key end

     0   :  { %12 = vsyncpa [#allocation4], 0  ;;  %s1482_s21 = smov [#allocation3]   ;;  %s1571_s0 = inlined_call_operand.vmem [shape: f32[8,128], index: 0, kind: input, shape index: {}]   ;;  %s1572_s1 = inlined_call_operand.vmem [shape: f32[2,8,128], index: 1, kind: input, shape index: {}, may-alias: {1,5}]   ;;  %s1573_s2 = inlined_call_operand.vmem [shape: f32[2,8,128], index: 2, kind: input, shape index: {}, may-alias: {2,6}]   ;;  %s1574_s3 = inlined_call_operand.hbm [shape: bf16[2,256,512], index: 3, kind: input, shape index: {}]   ;;  %s1575_s4 = inlined_call_operand.vmem [shape: f32[2,1,512], index: 4, kind: input, shape index: {}]   ;;  %s1576_s5 = inlined_call_operand.vmem [shape: f32[2,8,128], index: 5, kind: output, shape index: {0}, may-alias: {1,5}]   ;;  %s1577_s6 = inlined_call_operand.vmem [shape: f32[2,8,128], index: 6, kind: output, shape index: {1}, may-alias: {2,6}]  }
   0x1   :  { %s24_s22 = sshll.u32 %s1482_s21, 4  ;;  %s1458_s25 = scalar_lea.hbm %s1574_s3, 16384  ;;  %s25_s22 = int_to_ptr.vmem [resolvable:$true] %s24_s22 }
   0x2   :  { %p1459_p0 = scmp.ne.s32.totalorder %s1574_s3, %s1458_s25  ;;  %p1462_p1 = scmp.lt.u32.totalorder %s1458_s25, %s1574_s3 }
   0x4   :  { %p1464_p2 = pnand %p1462_p1, %p1459_p0 }
   0x6   :  { %1467 = shalt.err (!%p1464_p2)
}
   0x7   :  { %s1468_s30 = scalar_lea.vmem %s25_s22, 16384  ;;  %p1473_p4 = scmp.lt.s32.totalorder %s25_s22, %s25_s22 }
   0x8   :  { %p1469_p3 = scmp.ne.s32.totalorder %s25_s22, %s1468_s30  ;;  %p1474_p5 = scmp.lt.s32.totalorder %s1468_s30, %s1468_s30 }
   0xa   :  { %p1475_p6 = por %p1474_p5, %p1473_p4 }
   0xc   :  { %p1476_p7 = pnand %p1475_p6, %p1469_p3 }
   0xe   :  { %1479 = shalt.err (!%p1476_p7)
}
   0xf   :  { %s1483_s7 = smov 256   ;;  %s1484_s8 = smov 16  }
  0x10   :  { %30 = dma.hbm_to_vmem [thread:$0]  %s1574_s3, 16384, %s25_s22, [#allocation4], %s1483_s7, %s1483_s7, %s1484_s8  }
  0x11   :  { %1480 = dma.done.wait [#allocation4], 16384  }
  0x12   :  { %1481 = vsyncadd [#allocation4], 4294950912  ;;  %v1242_v0 = vld [vmem:[#allocation3 + $0x4] ss:$16 sps:$4 sm:$0xff]   ;;  %v1244_v1 = vld [vmem:[#allocation3] ss:$16 sps:$4 sm:$0xff]  }
  0x13   :  { %457 = vmatprep.subr.bf16.mxu0 %v1242_v0  ;;  %v1245_v2 = vld [vmem:[#allocation3 + $0xc] ss:$16 sps:$4 sm:$0xff]   ;;  %v1247_v3 = vld [vmem:[#allocation3 + $0x8] ss:$16 sps:$4 sm:$0xff]   ;;  %v1248_v4 = vld [vmem:[#allocation3 + $0x24] ss:$16 sps:$4 sm:$0xff]  }
  0x14   :  { %458 = vmatpush1.bf16.msra.mxu0 %v1244_v1  ;;  %v1250_v5 = vld [vmem:[#allocation3 + $0x20] ss:$16 sps:$4 sm:$0xff]   ;;  %498 = vmatprep.subr.bf16.mxu1 %v1245_v2  ;;  %v1251_v6 = vld [vmem:[#allocation3 + $0x2c] ss:$16 sps:$4 sm:$0xff]   ;;  %v1253_v7 = vld [vmem:[#allocation3 + $0x28] ss:$16 sps:$4 sm:$0xff]  }
  0x15   :  { %499 = vmatpush1.bf16.msra.mxu1 %v1247_v3  ;;  %459 = vmatprep.subr.bf16.mxu0 %v1248_v4  ;;  %v1254_v8 = vld [vmem:[#allocation3 + $0x44] ss:$16 sps:$4 sm:$0xff]   ;;  %v1256_v9 = vld [vmem:[#allocation3 + $0x40] ss:$16 sps:$4 sm:$0xff]   ;;  %v1257_v10 = vld [vmem:[#allocation3 + $0x4c] ss:$16 sps:$4 sm:$0xff]  }
  0x16   :  { %500 = vmatprep.subr.bf16.mxu1 %v1251_v6  ;;  %v1260_v11 = vld [vmem:[#allocation3 + $0x64] ss:$16 sps:$4 sm:$0xff]   ;;  %v1259_v12 = vld [vmem:[#allocation3 + $0x48] ss:$16 sps:$4 sm:$0xff]   ;;  %v1263_v13 = vld [vmem:[#allocation3 + $0x6c] ss:$16 sps:$4 sm:$0xff]  }
  0x17   :  { %v1262_v14 = vld [vmem:[#allocation3 + $0x60] ss:$16 sps:$4 sm:$0xff]   ;;  %v1266_v15 = vld [vmem:[#allocation3 + $0x84] ss:$16 sps:$4 sm:$0xff]   ;;  %v1265_v16 = vld [vmem:[#allocation3 + $0x68] ss:$16 sps:$4 sm:$0xff]  }
  0x18   :  { %460 = vmatpush1.bf16.msra.mxu0 %v1250_v5  ;;  %v1269_v17 = vld [vmem:[#allocation3 + $0x8c] ss:$16 sps:$4 sm:$0xff]   ;;  %v1268_v18 = vld [vmem:[#allocation3 + $0x80] ss:$16 sps:$4 sm:$0xff]   ;;  %v1272_v19 = vld [vmem:[#allocation3 + $0xa4] ss:$16 sps:$4 sm:$0xff]  }
  0x19   :  { %461 = vmatprep.subr.bf16.mxu0 %v1254_v8  ;;  %501 = vmatpush1.bf16.msra.mxu1 %v1253_v7  ;;  %v1271_v20 = vld [vmem:[#allocation3 + $0x88] ss:$16 sps:$4 sm:$0xff]   ;;  %v1275_v21 = vld [vmem:[#allocation3 + $0xac] ss:$16 sps:$4 sm:$0xff]   ;;  %v1274_v22 = vld [vmem:[#allocation3 + $0xa0] ss:$16 sps:$4 sm:$0xff]  }
  0x1a   :  { %502 = vmatprep.subr.bf16.mxu1 %v1257_v10  ;;  %v1278_v23 = vld [vmem:[#allocation3 + $0xc4] ss:$16 sps:$4 sm:$0xff]   ;;  %v1277_v24 = vld [vmem:[#allocation3 + $0xa8] ss:$16 sps:$4 sm:$0xff]   ;;  %v1281_v25 = vld [vmem:[#allocation3 + $0xcc] ss:$16 sps:$4 sm:$0xff]  }
  0x1b   :  { %v1280_v26 = vld [vmem:[#allocation3 + $0xc0] ss:$16 sps:$4 sm:$0xff]   ;;  %v1284_v27 = vld [vmem:[#allocation3 + $0xe4] ss:$16 sps:$4 sm:$0xff]   ;;  %v1283_v28 = vld [vmem:[#allocation3 + $0xc8] ss:$16 sps:$4 sm:$0xff]  }
  0x1c   :  { %462 = vmatpush1.bf16.msra.mxu0 %v1256_v9  ;;  %v1287_v29 = vld [vmem:[#allocation3 + $0xec] ss:$16 sps:$4 sm:$0xff]   ;;  %v1286_v30 = vld [vmem:[#allocation3 + $0xe0] ss:$16 sps:$4 sm:$0xff]   ;;  %v1290_v31 = vld [vmem:[#allocation3 + $0x104] ss:$16 sps:$4 sm:$0xff]  }
  0x1d   :  { %463 = vmatprep.subr.bf16.mxu0 %v1260_v11  ;;  %503 = vmatpush1.bf16.msra.mxu1 %v1259_v12  ;;  %v1289_v32 = vld [vmem:[#allocation3 + $0xe8] ss:$16 sps:$4 sm:$0xff]   ;;  %v1293_v33 = vld [vmem:[#allocation3 + $0x10c] ss:$16 sps:$4 sm:$0xff]   ;;  %v1292_v34 = vld [vmem:[#allocation3 + $0x100] ss:$16 sps:$4 sm:$0xff]  }
  0x1e   :  { %504 = vmatprep.subr.bf16.mxu1 %v1263_v13  ;;  %v1296_v35 = vld [vmem:[#allocation3 + $0x124] ss:$16 sps:$4 sm:$0xff]   ;;  %v1295_v36 = vld [vmem:[#allocation3 + $0x108] ss:$16 sps:$4 sm:$0xff]   ;;  %v1299_v37 = vld [vmem:[#allocation3 + $0x12c] ss:$16 sps:$4 sm:$0xff]  }
  0x1f   :  { %v1298_v38 = vld [vmem:[#allocation3 + $0x120] ss:$16 sps:$4 sm:$0xff]   ;;  %v1302_v39 = vld [vmem:[#allocation3 + $0x144] ss:$16 sps:$4 sm:$0xff]   ;;  %v1301_v40 = vld [vmem:[#allocation3 + $0x128] ss:$16 sps:$4 sm:$0xff]  }
  0x20   :  { %464 = vmatpush1.bf16.msra.mxu0 %v1262_v14  ;;  %v1305_v41 = vld [vmem:[#allocation3 + $0x14c] ss:$16 sps:$4 sm:$0xff]   ;;  %v1304_v42 = vld [vmem:[#allocation3 + $0x140] ss:$16 sps:$4 sm:$0xff]   ;;  %v1308_v43 = vld [vmem:[#allocation3 + $0x164] ss:$16 sps:$4 sm:$0xff]  }
  0x21   :  { %465 = vmatprep.subr.bf16.mxu0 %v1266_v15  ;;  %505 = vmatpush1.bf16.msra.mxu1 %v1265_v16  ;;  %v1307_v44 = vld [vmem:[#allocation3 + $0x148] ss:$16 sps:$4 sm:$0xff]   ;;  %v1311_v45 = vld [vmem:[#allocation3 + $0x16c] ss:$16 sps:$4 sm:$0xff]   ;;  %v36_v46 = vld [vmem:[%s1571_s0] sm:$0xff] }
  0x22   :  { %506 = vmatprep.subr.bf16.mxu1 %v1269_v17  ;;  %v39_v47 = vld [vmem:[%s1572_s1] sm:$0xff]  ;;  %v1313_v50 = vld [vmem:[#allocation3 + $0x168] ss:$16 sps:$4 sm:$0xff]   ;;  %v1317_v52 = vld [vmem:[#allocation3 + $0x18c] ss:$16 sps:$4 sm:$0xff]   ;;  %v1455_v6 = vpack.c.bf16 %v36_v46, %v36_v46 }
  0x23   :  { %v1310_v48 = vld [vmem:[#allocation3 + $0x160] ss:$16 sps:$4 sm:$0xff]   ;;  %v1314_v49 = vld [vmem:[#allocation3 + $0x184] ss:$16 sps:$4 sm:$0xff]   ;;  %v1454_v51 = vpack.c.bf16 %v39_v47, %v39_v47  ;;  %v1319_v55 = vld [vmem:[#allocation3 + $0x188] ss:$16 sps:$4 sm:$0xff]  }
  0x24   :  { %466 = vmatpush1.bf16.msra.mxu0 %v1268_v18  ;;  %v1316_v53 = vld [vmem:[#allocation3 + $0x180] ss:$16 sps:$4 sm:$0xff]   ;;  %v1320_v54 = vld [vmem:[#allocation3 + $0x1a4] ss:$16 sps:$4 sm:$0xff]   ;;  %v1323_v56 = vld [vmem:[#allocation3 + $0x1ac] ss:$16 sps:$4 sm:$0xff]  }
  0x25   :  { %467 = vmatprep.subr.bf16.mxu0 %v1272_v19  ;;  %507 = vmatpush1.bf16.msra.mxu1 %v1271_v20  ;;  %v1322_v57 = vld [vmem:[#allocation3 + $0x1a0] ss:$16 sps:$4 sm:$0xff]   ;;  %v1325_v58 = vld [vmem:[#allocation3 + $0x1a8] ss:$16 sps:$4 sm:$0xff]   ;;  %v1326_v59 = vld [vmem:[#allocation3 + $0x1c4] ss:$16 sps:$4 sm:$0xff]  }
  0x26   :  { %508 = vmatprep.subr.bf16.mxu1 %v1275_v21  ;;  %489 = vmatprep.mubr.bf16.mxu0 %v1454_v51  ;;  %v1328_v60 = vld [vmem:[#allocation3 + $0x1c0] ss:$16 sps:$4 sm:$0xff]   ;;  %v1329_v61 = vld [vmem:[#allocation3 + $0x1cc] ss:$16 sps:$4 sm:$0xff]   ;;  %v1332_v62 = vld [vmem:[#allocation3 + $0x1e4] ss:$16 sps:$4 sm:$0xff]  }
  0x27   :  { %530 = vmatprep.mubr.bf16.mxu1 %v1454_v51  ;;  %v1331_v63 = vld [vmem:[#allocation3 + $0x1c8] ss:$16 sps:$4 sm:$0xff]   ;;  %v1335_v0 = vld [vmem:[#allocation3 + $0x1ec] ss:$16 sps:$4 sm:$0xff]   ;;  %v1334_v1 = vld [vmem:[#allocation3 + $0x1e0] ss:$16 sps:$4 sm:$0xff]  }
  0x28   :  { %468 = vmatpush1.bf16.msra.mxu0 %v1274_v22  ;;  %v1340_v2 = vld [vmem:[#allocation3 + $0x204] ss:$16 sps:$4 sm:$0xff]   ;;  %v1337_v3 = vld [vmem:[#allocation3 + $0x1e8] ss:$16 sps:$4 sm:$0xff]   ;;  %v1343_v4 = vld [vmem:[#allocation3 + $0x20c] ss:$16 sps:$4 sm:$0xff]  }
  0x29   :  { %469 = vmatprep.subr.bf16.mxu0 %v1278_v23  ;;  %509 = vmatpush1.bf16.msra.mxu1 %v1277_v24  ;;  %v1338_v5 = vld [vmem:[#allocation3 + $0x200] ss:$16 sps:$4 sm:$0xff]   ;;  %v1346_v7 = vld [vmem:[#allocation3 + $0x224] ss:$16 sps:$4 sm:$0xff]   ;;  %v1341_v8 = vld [vmem:[#allocation3 + $0x208] ss:$16 sps:$4 sm:$0xff]  }
  0x2a   :  { %510 = vmatprep.subr.bf16.mxu1 %v1281_v25  ;;  %v1349_v9 = vld [vmem:[#allocation3 + $0x22c] ss:$16 sps:$4 sm:$0xff]   ;;  %v1344_v10 = vld [vmem:[#allocation3 + $0x220] ss:$16 sps:$4 sm:$0xff]   ;;  %v1352_v11 = vld [vmem:[#allocation3 + $0x244] ss:$16 sps:$4 sm:$0xff]  }
  0x2b   :  { %v1347_v12 = vld [vmem:[#allocation3 + $0x228] ss:$16 sps:$4 sm:$0xff]   ;;  %v1355_v13 = vld [vmem:[#allocation3 + $0x24c] ss:$16 sps:$4 sm:$0xff]   ;;  %v1350_v14 = vld [vmem:[#allocation3 + $0x240] ss:$16 sps:$4 sm:$0xff]  }
  0x2c   :  { %470 = vmatpush1.bf16.msra.mxu0 %v1280_v26  ;;  %v1358_v15 = vld [vmem:[#allocation3 + $0x264] ss:$16 sps:$4 sm:$0xff]   ;;  %v1353_v16 = vld [vmem:[#allocation3 + $0x248] ss:$16 sps:$4 sm:$0xff]   ;;  %v1361_v17 = vld [vmem:[#allocation3 + $0x26c] ss:$16 sps:$4 sm:$0xff]  }
  0x2d   :  { %471 = vmatprep.subr.bf16.mxu0 %v1284_v27  ;;  %511 = vmatpush1.bf16.msra.mxu1 %v1283_v28  ;;  %v1356_v18 = vld [vmem:[#allocation3 + $0x260] ss:$16 sps:$4 sm:$0xff]   ;;  %v1359_v19 = vld [vmem:[#allocation3 + $0x268] ss:$16 sps:$4 sm:$0xff]   ;;  %v1364_v20 = vld [vmem:[#allocation3 + $0x284] ss:$16 sps:$4 sm:$0xff]  }
  0x2e   :  { %512 = vmatprep.subr.bf16.mxu1 %v1287_v29  ;;  %v1367_v21 = vld [vmem:[#allocation3 + $0x28c] ss:$16 sps:$4 sm:$0xff]   ;;  %v1362_v22 = vld [vmem:[#allocation3 + $0x280] ss:$16 sps:$4 sm:$0xff]   ;;  %v1365_v23 = vld [vmem:[#allocation3 + $0x288] ss:$16 sps:$4 sm:$0xff]  }
  0x2f   :  { %v1370_v24 = vld [vmem:[#allocation3 + $0x2a4] ss:$16 sps:$4 sm:$0xff]   ;;  %v1373_v25 = vld [vmem:[#allocation3 + $0x2ac] ss:$16 sps:$4 sm:$0xff]   ;;  %v1368_v26 = vld [vmem:[#allocation3 + $0x2a0] ss:$16 sps:$4 sm:$0xff]  }
  0x30   :  { %472 = vmatpush1.bf16.msra.mxu0 %v1286_v30  ;;  %v1371_v27 = vld [vmem:[#allocation3 + $0x2a8] ss:$16 sps:$4 sm:$0xff]   ;;  %v1376_v28 = vld [vmem:[#allocation3 + $0x2c4] ss:$16 sps:$4 sm:$0xff]   ;;  %v1379_v29 = vld [vmem:[#allocation3 + $0x2cc] ss:$16 sps:$4 sm:$0xff]  }
  0x31   :  { %473 = vmatprep.subr.bf16.mxu0 %v1290_v31  ;;  %513 = vmatpush1.bf16.msra.mxu1 %v1289_v32  ;;  %v1374_v30 = vld [vmem:[#allocation3 + $0x2c0] ss:$16 sps:$4 sm:$0xff]   ;;  %v1377_v31 = vld [vmem:[#allocation3 + $0x2c8] ss:$16 sps:$4 sm:$0xff]   ;;  %v1382_v32 = vld [vmem:[#allocation3 + $0x2e4] ss:$16 sps:$4 sm:$0xff]  }
  0x32   :  { %514 = vmatprep.subr.bf16.mxu1 %v1293_v33  ;;  %v1385_v33 = vld [vmem:[#allocation3 + $0x2ec] ss:$16 sps:$4 sm:$0xff]   ;;  %v1398_v46 = vld [vmem:[#allocation3 + $0x340] ss:$16 sps:$4 sm:$0xff]   ;;  %v1401_v47 = vld [vmem:[#allocation3 + $0x348] ss:$16 sps:$4 sm:$0xff]  }
  0x33   :  { %v1407_v51 = vld [vmem:[#allocation3 + $0x368] ss:$16 sps:$4 sm:$0xff]  }
  0x34   :  { %474 = vmatpush1.bf16.msra.mxu0 %v1292_v34  ;;  %v1380_v34 = vld [vmem:[#allocation3 + $0x2e0] ss:$16 sps:$4 sm:$0xff]  }
  0x35   :  { %475 = vmatprep.subr.bf16.mxu0 %v1296_v35  ;;  %515 = vmatpush1.bf16.msra.mxu1 %v1295_v36  ;;  %v1383_v35 = vld [vmem:[#allocation3 + $0x2e8] ss:$16 sps:$4 sm:$0xff]   ;;  %v1388_v36 = vld [vmem:[#allocation3 + $0x304] ss:$16 sps:$4 sm:$0xff]  }
  0x36   :  { %516 = vmatprep.subr.bf16.mxu1 %v1299_v37  ;;  %v1391_v37 = vld [vmem:[#allocation3 + $0x30c] ss:$16 sps:$4 sm:$0xff]  }
  0x38   :  { %476 = vmatpush1.bf16.msra.mxu0 %v1298_v38  ;;  %v1386_v38 = vld [vmem:[#allocation3 + $0x300] ss:$16 sps:$4 sm:$0xff]  }
  0x39   :  { %477 = vmatprep.subr.bf16.mxu0 %v1302_v39  ;;  %517 = vmatpush1.bf16.msra.mxu1 %v1301_v40  ;;  %v1389_v39 = vld [vmem:[#allocation3 + $0x308] ss:$16 sps:$4 sm:$0xff]   ;;  %v1394_v40 = vld [vmem:[#allocation3 + $0x324] ss:$16 sps:$4 sm:$0xff]  }
  0x3a   :  { %518 = vmatprep.subr.bf16.mxu1 %v1305_v41  ;;  %v1397_v41 = vld [vmem:[#allocation3 + $0x32c] ss:$16 sps:$4 sm:$0xff]  }
  0x3c   :  { %478 = vmatpush1.bf16.msra.mxu0 %v1304_v42  ;;  %v1392_v42 = vld [vmem:[#allocation3 + $0x320] ss:$16 sps:$4 sm:$0xff]  }
  0x3d   :  { %479 = vmatprep.subr.bf16.mxu0 %v1308_v43  ;;  %519 = vmatpush1.bf16.msra.mxu1 %v1307_v44  ;;  %v1395_v43 = vld [vmem:[#allocation3 + $0x328] ss:$16 sps:$4 sm:$0xff]   ;;  %v1400_v44 = vld [vmem:[#allocation3 + $0x344] ss:$16 sps:$4 sm:$0xff]  }
  0x3e   :  { %520 = vmatprep.subr.bf16.mxu1 %v1311_v45  ;;  %v1403_v45 = vld [vmem:[#allocation3 + $0x34c] ss:$16 sps:$4 sm:$0xff]  }
  0x40   :  { %480 = vmatpush1.bf16.msra.mxu0 %v1310_v48  ;;  %v1406_v48 = vld [vmem:[#allocation3 + $0x364] ss:$16 sps:$4 sm:$0xff]  }
  0x41   :  { %481 = vmatprep.subr.bf16.mxu0 %v1314_v49  ;;  %521 = vmatpush1.bf16.msra.mxu1 %v1313_v50  ;;  %v1409_v49 = vld [vmem:[#allocation3 + $0x36c] ss:$16 sps:$4 sm:$0xff]   ;;  %v1404_v50 = vld [vmem:[#allocation3 + $0x360] ss:$16 sps:$4 sm:$0xff]  }
  0x42   :  { %522 = vmatprep.subr.bf16.mxu1 %v1317_v52  ;;  %v1412_v52 = vld [vmem:[#allocation3 + $0x384] ss:$16 sps:$4 sm:$0xff]  }
  0x44   :  { %482 = vmatpush1.bf16.msra.mxu0 %v1316_v53  ;;  %v1415_v53 = vld [vmem:[#allocation3 + $0x38c] ss:$16 sps:$4 sm:$0xff]  }
  0x45   :  { %483 = vmatprep.subr.bf16.mxu0 %v1320_v54  ;;  %523 = vmatpush1.bf16.msra.mxu1 %v1319_v55  ;;  %v1410_v54 = vld [vmem:[#allocation3 + $0x380] ss:$16 sps:$4 sm:$0xff]   ;;  %v1413_v55 = vld [vmem:[#allocation3 + $0x388] ss:$16 sps:$4 sm:$0xff]  }
  0x46   :  { %524 = vmatprep.subr.bf16.mxu1 %v1323_v56  ;;  %v1418_v56 = vld [vmem:[#allocation3 + $0x3a4] ss:$16 sps:$4 sm:$0xff]  }
  0x48   :  { %484 = vmatpush1.bf16.msra.mxu0 %v1322_v57  ;;  %v1421_v57 = vld [vmem:[#allocation3 + $0x3ac] ss:$16 sps:$4 sm:$0xff]  }
  0x49   :  { %485 = vmatprep.subr.bf16.mxu0 %v1326_v59  ;;  %525 = vmatpush1.bf16.msra.mxu1 %v1325_v58  ;;  %v1416_v58 = vld [vmem:[#allocation3 + $0x3a0] ss:$16 sps:$4 sm:$0xff]   ;;  %v1419_v59 = vld [vmem:[#allocation3 + $0x3a8] ss:$16 sps:$4 sm:$0xff]  }
  0x4a   :  { %526 = vmatprep.subr.bf16.mxu1 %v1329_v61  ;;  %v1427_v61 = vld [vmem:[#allocation3 + $0x3cc] ss:$16 sps:$4 sm:$0xff]  }
  0x4c   :  { %486 = vmatpush1.bf16.msra.mxu0 %v1328_v60  ;;  %v1424_v60 = vld [vmem:[#allocation3 + $0x3c4] ss:$16 sps:$4 sm:$0xff]  }
  0x4d   :  { %487 = vmatprep.subr.bf16.mxu0 %v1332_v62  ;;  %527 = vmatpush1.bf16.msra.mxu1 %v1331_v63  ;;  %v1422_v62 = vld [vmem:[#allocation3 + $0x3c0] ss:$16 sps:$4 sm:$0xff]   ;;  %v1425_v63 = vld [vmem:[#allocation3 + $0x3c8] ss:$16 sps:$4 sm:$0xff]  }
  0x4e   :  { %528 = vmatprep.subr.bf16.mxu1 %v1335_v0  ;;  %v1430_v0 = vld [vmem:[#allocation3 + $0x3e4] ss:$16 sps:$4 sm:$0xff]  }
  0x50   :  { %488 = vmatpush1.bf16.msra.mxu0 %v1334_v1  ;;  %v1433_v1 = vld [vmem:[#allocation3 + $0x3ec] ss:$16 sps:$4 sm:$0xff]  }
  0x51   :  { %980 = vmatprep.subr.bf16.mxu0 %v1340_v2  ;;  %529 = vmatpush1.bf16.msra.mxu1 %v1337_v3  ;;  %v1428_v2 = vld [vmem:[#allocation3 + $0x3e0] ss:$16 sps:$4 sm:$0xff]   ;;  %v1431_v3 = vld [vmem:[#allocation3 + $0x3e8] ss:$16 sps:$4 sm:$0xff]  }
  0x52   :  { %1021 = vmatprep.subr.bf16.mxu1 %v1343_v4  ;;  %v110_v4 = vlaneseq }
  0x53   :  { %490 = vmatmul.mubr.bf16.vlgmr.msra.gmra.mrb[0].mxu0 %v1455_v6 }
  0x54   :  { %981 = vmatpush1.bf16.msra.mxu0 %v1338_v5  ;;  %531 = vmatmul.mubr.bf16.vlgmr.msra.gmra.mrb[0].mxu1 %v1455_v6  ;;  %v1538_v5 = vshrl.u32 %v110_v4, 7 }
  0x55   :  { %982 = vmatprep.subr.bf16.mxu0 %v1346_v7  ;;  %1022 = vmatpush1.bf16.msra.mxu1 %v1341_v8  ;;  %v108_v7 = vld [vmem:[%s1575_s4] sm:$0xf] }
  0x56   :  { %1023 = vmatprep.subr.bf16.mxu1 %v1349_v9  ;;  %v112_v6 = vsub.s32 0, %v1538_v5  ;;  %v116_v8 = vsub.s32 1, %v1538_v5  ;;  %v120_v9 = vsub.s32 2, %v1538_v5 }
  0x58   :  { %983 = vmatpush1.bf16.msra.mxu0 %v1344_v10  ;;  %v113_v10 = vrot.slane %v108_v7, %v112_v6 }
  0x59   :  { %984 = vmatprep.subr.bf16.mxu0 %v1352_v11  ;;  %1024 = vmatpush1.bf16.msra.mxu1 %v1347_v12  ;;  %v117_v11 = vrot.slane %v108_v7, %v116_v8  ;;  %v121_v12 = vrot.slane %v108_v7, %v120_v9 }
  0x5a   :  { %1025 = vmatprep.subr.bf16.mxu1 %v1355_v13 }
  0x5c   :  { %985 = vmatpush1.bf16.msra.mxu0 %v1350_v14 }
  0x5d   :  { %986 = vmatprep.subr.bf16.mxu0 %v1358_v15  ;;  %1026 = vmatpush1.bf16.msra.mxu1 %v1353_v16 }
  0x5e   :  { %1027 = vmatprep.subr.bf16.mxu1 %v1361_v17 }
  0x60   :  { %987 = vmatpush1.bf16.msra.mxu0 %v1356_v18 }
  0x61   :  { %1028 = vmatpush1.bf16.msra.mxu1 %v1359_v19  ;;  %988 = vmatprep.subr.bf16.mxu0 %v1364_v20 }
  0x62   :  { %1029 = vmatprep.subr.bf16.mxu1 %v1367_v21  ;;  %v124_v21 = vsub.s32 3, %v1538_v5 }
  0x64   :  { %989 = vmatpush1.bf16.msra.mxu0 %v1362_v22 }
  0x65   :  { %1030 = vmatpush1.bf16.msra.mxu1 %v1365_v23  ;;  %990 = vmatprep.subr.bf16.mxu0 %v1370_v24 }
  0x66   :  { %1031 = vmatprep.subr.bf16.mxu1 %v1373_v25  ;;  %v125_v25 = vrot.slane %v108_v7, %v124_v21 }
  0x68   :  { %991 = vmatpush1.bf16.msra.mxu0 %v1368_v26 }
  0x69   :  { %1032 = vmatpush1.bf16.msra.mxu1 %v1371_v27  ;;  %992 = vmatprep.subr.bf16.mxu0 %v1376_v28 }
  0x6a   :  { %1033 = vmatprep.subr.bf16.mxu1 %v1379_v29 }
  0x6c   :  { %993 = vmatpush1.bf16.msra.mxu0 %v1374_v30 }
  0x6d   :  { %1034 = vmatpush1.bf16.msra.mxu1 %v1377_v31  ;;  %994 = vmatprep.subr.bf16.mxu0 %v1382_v32 }
  0x6e   :  { %1035 = vmatprep.subr.bf16.mxu1 %v1385_v33  ;;  %v42_v33 = vld [vmem:[%s1573_s2] sm:$0xff] }
  0x70   :  { %995 = vmatpush1.bf16.msra.mxu0 %v1380_v34 }
  0x71   :  { %1036 = vmatpush1.bf16.msra.mxu1 %v1383_v35  ;;  %996 = vmatprep.subr.bf16.mxu0 %v1388_v36 }
  0x72   :  { %1037 = vmatprep.subr.bf16.mxu1 %v1391_v37 }
  0x74   :  { %997 = vmatpush1.bf16.msra.mxu0 %v1386_v38 }
  0x75   :  { %1038 = vmatpush1.bf16.msra.mxu1 %v1389_v39  ;;  %998 = vmatprep.subr.bf16.mxu0 %v1394_v40 }
  0x76   :  { %1039 = vmatprep.subr.bf16.mxu1 %v1397_v41 }
  0x78   :  { %999 = vmatpush1.bf16.msra.mxu0 %v1392_v42  ;;  %v1158_v42 = vld [vmem:[%s1572_s1 + $0x8] sm:$0xff] }
  0x79   :  { %1040 = vmatpush1.bf16.msra.mxu1 %v1395_v43  ;;  %1000 = vmatprep.subr.bf16.mxu0 %v1400_v44  ;;  %v1456_v44 = vpack.c.bf16 %v1158_v42, %v1158_v42 }
  0x7a   :  { %1041 = vmatprep.subr.bf16.mxu1 %v1403_v45 }
  0x7b   :  { %1012 = vmatprep.mubr.bf16.mxu0 %v1456_v44  ;;  %1053 = vmatprep.mubr.bf16.mxu1 %v1456_v44 }
  0x7c   :  { %1001 = vmatpush1.bf16.msra.mxu0 %v1398_v46  ;;  %v1160_v46 = vld [vmem:[%s1575_s4 + $0x4] sm:$0xf] }
  0x7d   :  { %1042 = vmatpush1.bf16.msra.mxu1 %v1401_v47  ;;  %1002 = vmatprep.subr.bf16.mxu0 %v1406_v48  ;;  %v636_v47 = vrot.slane %v1160_v46, %v112_v6  ;;  %v640_v48 = vrot.slane %v1160_v46, %v116_v8 }
  0x7e   :  { %1043 = vmatprep.subr.bf16.mxu1 %v1409_v49  ;;  %v644_v49 = vrot.slane %v1160_v46, %v120_v9 }
  0x80   :  { %1003 = vmatpush1.bf16.msra.mxu0 %v1404_v50 }
  0x81   :  { %1044 = vmatpush1.bf16.msra.mxu1 %v1407_v51  ;;  %1004 = vmatprep.subr.bf16.mxu0 %v1412_v52 }
  0x82   :  { %1045 = vmatprep.subr.bf16.mxu1 %v1415_v53 }
  0x84   :  { %1005 = vmatpush1.bf16.msra.mxu0 %v1410_v54 }
  0x85   :  { %1046 = vmatpush1.bf16.msra.mxu1 %v1413_v55  ;;  %1006 = vmatprep.subr.bf16.mxu0 %v1418_v56 }
  0x86   :  { %1047 = vmatprep.subr.bf16.mxu1 %v1421_v57 }
  0x88   :  { %1007 = vmatpush1.bf16.msra.mxu0 %v1416_v58 }
  0x89   :  { %1048 = vmatpush1.bf16.msra.mxu1 %v1419_v59  ;;  %1008 = vmatprep.subr.bf16.mxu0 %v1424_v60 }
  0x8a   :  { %1049 = vmatprep.subr.bf16.mxu1 %v1427_v61  ;;  %v648_v61 = vrot.slane %v1160_v46, %v124_v21 }
  0x8c   :  { %1009 = vmatpush1.bf16.msra.mxu0 %v1422_v62 }
  0x8d   :  { %1050 = vmatpush1.bf16.msra.mxu1 %v1425_v63  ;;  %1010 = vmatprep.subr.bf16.mxu0 %v1430_v0 }
  0x8e   :  { %1051 = vmatprep.subr.bf16.mxu1 %v1433_v1 }
  0x90   :  { %1011 = vmatpush1.bf16.msra.mxu0 %v1428_v2 }
  0x91   :  { %1052 = vmatpush1.bf16.msra.mxu1 %v1431_v3 }
 0x126   :  { %v491_v13 = vpop.f32.mrb[0].mxu0 }
 0x127   :  { %v492_v14 = vadd.f32 %v491_v13, %v113_v10  ;;  %v493_v15 = vpop.f32.mrb[1].mxu0  ;;  %v532_v18 = vpop.f32.mrb[0].mxu1 }
 0x128   :  { %v494_v16 = vadd.f32 %v493_v15, %v117_v11  ;;  %v495_v17 = vpop.f32.mrb[2].mxu0  ;;  %v533_v19 = vadd.f32 %v532_v18, %v121_v12  ;;  %v534_v22 = vpop.f32.mrb[1].mxu1 }
 0x129   :  { %1434 = vtanh.f32 %v492_v14  ;;  %v496_v20 = vpop.f32.mrb[3].mxu0  ;;  %v536_v23 = vpop.f32.mrb[2].mxu1  ;;  %v535_v26 = vadd.f32 %v534_v22, %v125_v25 }
 0x12a   :  { %1436 = vtanh.f32 %v494_v16  ;;  %v537_v24 = vpop.f32.mrb[3].mxu1 }
 0x12b   :  { %1438 = vtanh.f32 %v533_v19 }
 0x12c   :  { %1440 = vtanh.f32 %v535_v26 }
 0x133   :  { %v1435_v27 = vpop.eup %1434 }
 0x134   :  { %v1437_v28 = vpop.eup %1436  ;;  %v543_v29 = vadd.f32 1.0, %v1435_v27 }
 0x135   :  { %v1439_v30 = vpop.eup %1438  ;;  %v545_v31 = vadd.f32 1.0, %v1437_v28 }
 0x136   :  { %v544_v32 = vmul.f32 0.5, %v543_v29  ;;  %v1441_v38 = vpop.eup %1440 }
 0x137   :  { %v546_v34 = vmul.f32 0.5, %v545_v31  ;;  %v547_v39 = vadd.f32 1.0, %v1441_v38 }
 0x138   :  { %v550_v35 = vmul.f32 %v1439_v30, %v544_v32 }
 0x139   :  { %v549_v36 = vmul.f32 %v546_v34, %v42_v33  ;;  %v548_v40 = vmul.f32 0.5, %v547_v39 }
 0x13b   :  { %v551_v37 = vadd.f32 %v550_v35, %v549_v36 }
 0x13d   :  { %1442 = vtanh.f32 %v551_v37  ;;  %555 = vst [vmem:[%s1577_s6] sm:$0xff] %v551_v37 }
 0x144   :  { %v1159_v5 = vld [vmem:[%s1573_s2 + $0x8] sm:$0xff] }
 0x147   :  { %v1443_v41 = vpop.eup %1442 }
 0x148   :  { %v553_v43 = vmul.f32 %v1443_v41, %v548_v40 }
 0x14a   :  { %554 = vst [vmem:[%s1576_s5] sm:$0xff] %v553_v43  ;;  %v1457_v45 = vpack.c.bf16 %v553_v43, %v553_v43 }
 0x14c   :  { %1013 = vmatmul.mubr.bf16.vlgmr.msra.gmra.mrb[4].mxu0 %v1457_v45  ;;  %1054 = vmatmul.mubr.bf16.vlgmr.msra.gmra.mrb[4].mxu1 %v1457_v45 }
 0x21f   :  { %v1014_v50 = vpop.f32.mrb[4].mxu0  ;;  %v1055_v51 = vpop.f32.mrb[4].mxu1 }
 0x220   :  { %v1015_v52 = vadd.f32 %v1014_v50, %v636_v47  ;;  %v1016_v53 = vpop.f32.mrb[5].mxu0  ;;  %v1057_v54 = vpop.f32.mrb[5].mxu1  ;;  %v1056_v58 = vadd.f32 %v1055_v51, %v644_v49 }
 0x221   :  { %v1017_v55 = vadd.f32 %v1016_v53, %v640_v48  ;;  %v1018_v56 = vpop.f32.mrb[6].mxu0  ;;  %v1059_v57 = vpop.f32.mrb[6].mxu1  ;;  %v1058_v62 = vadd.f32 %v1057_v54, %v648_v61 }
 0x222   :  { %1444 = vtanh.f32 %v1015_v52  ;;  %v1019_v59 = vpop.f32.mrb[7].mxu0  ;;  %v1060_v60 = vpop.f32.mrb[7].mxu1 }
 0x223   :  { %1446 = vtanh.f32 %v1017_v55 }
 0x224   :  { %1448 = vtanh.f32 %v1056_v58 }
 0x225   :  { %1450 = vtanh.f32 %v1058_v62 }
 0x22c   :  { %v1445_v63 = vpop.eup %1444 }
 0x22d   :  { %v1066_v0 = vadd.f32 1.0, %v1445_v63  ;;  %v1447_v1 = vpop.eup %1446 }
 0x22e   :  { %v1068_v3 = vadd.f32 1.0, %v1447_v1  ;;  %v1449_v4 = vpop.eup %1448 }
 0x22f   :  { %v1067_v2 = vmul.f32 0.5, %v1066_v0  ;;  %v1451_v10 = vpop.eup %1450 }
 0x230   :  { %v1069_v6 = vmul.f32 0.5, %v1068_v3  ;;  %v1070_v11 = vadd.f32 1.0, %v1451_v10 }
 0x231   :  { %v1073_v7 = vmul.f32 %v1449_v4, %v1067_v2 }
 0x232   :  { %v1072_v8 = vmul.f32 %v1159_v5, %v1069_v6  ;;  %v1071_v12 = vmul.f32 0.5, %v1070_v11 }
 0x234   :  { %v1074_v9 = vadd.f32 %v1073_v7, %v1072_v8 }
 0x236   :  { %1452 = vtanh.f32 %v1074_v9  ;;  %1228 = vst [vmem:[%s1577_s6 + $0x8] sm:$0xff] %v1074_v9 }
 0x240   :  { %v1453_v13 = vpop.eup %1452 }
 0x241   :  { %v1076_v14 = vmul.f32 %v1453_v13, %v1071_v12 }
 0x243   :  { %1227 = vst [vmem:[%s1576_s5 + $0x8] sm:$0xff] %v1076_v14 }
 0x244   :  { %1091 = vsyncpa [#allocation4], 1 }

</bundles_post_ra>
